<compile_context>
chip_gen: v7x
topology: tpu7x:2x2x1
jax: 0.10.0
libtpu: 0.0.40
codegen_flags: <defaults>
</compile_context>

<pallas_src>
import jax
import jax.numpy as jnp
import numpy as np
from jax.experimental import pallas as pl
from jax.experimental.pallas import tpu as pltpu

HIDDEN = 32        # H
SRC_LEN = 8        # S  (must equal BATCH: the module's torch.bmm requires it)
BATCH = 8          # B
OUTPUT_SIZE = 128  # O (vocab) -- lane-dense logits output
N_LAYERS = 1


def _sigmoid(x):
    return 1.0 / (1.0 + jnp.exp(-x))


def _attn_decoder_gru_kernel(
    emb_ref, hid_ref, enc_bm_ref, enc_sm_ref,
    wh_ref, we_ref, battn_ref, v_ref,
    wih_e_ref, wih_a_ref, whh_ref, bih_ref, bhh_ref,
    wo_g_ref, wo_a_ref, bout_ref,
    logp_ref, hnew_ref,
):
    B, H = hid_ref.shape
    S = enc_bm_ref.shape[0] // B

    emb = emb_ref[...]                                 # (B, H) embedded token (dropout=identity)
    hid = hid_ref[...]                                 # (B, H) previous decoder hidden
    enc_sm = enc_sm_ref[...].reshape(S, B, H)          # seq-major (original) layout

    # ---------------- Attention scores ----------------
    # Hidden projection + bias computed once, broadcast over S.
    base = jnp.dot(hid, wh_ref[...], preferred_element_type=jnp.float32) + battn_ref[...]
    proj = jnp.dot(enc_bm_ref[...], we_ref[...], preferred_element_type=jnp.float32)  # (B*S, H)
    energy = jnp.tanh(proj.reshape(B, S, H) + base[:, None, :])                       # (B, S, H)
    # v-projection as VPU multiply + lane reduce (avoids an N=1 MXU matmul).
    scores = jnp.sum(energy * v_ref[...], axis=-1)                                    # (B, S)

    # softmax over src_len (dim 0 of the module's (S,B) scores) -> lane reduce here.
    m = jnp.max(scores, axis=-1, keepdims=True)
    e = jnp.exp(scores - m)
    denom = jnp.sum(e, axis=-1, keepdims=True)
    attn_w = e * pl.reciprocal(denom, approx=True)     # (B, S);  W[s, b] == attn_w[b, s]

    # ------- attn_applied = torch.bmm(W.unsqueeze(1), enc.permute(1,0,2)).squeeze(1) -------
    # applied[i, :] = sum_m W[i, m] * enc[m, i, :] = sum_m attn_w[m, i] * enc_sm[m, i, :]
    applied = jnp.sum(attn_w[:, :, None] * enc_sm, axis=0)                            # (B, H)

    # ---------------- GRU cell (PyTorch gate order r, z, n) ----------------
    gx = (jnp.dot(emb, wih_e_ref[...], preferred_element_type=jnp.float32)
          + jnp.dot(applied, wih_a_ref[...], preferred_element_type=jnp.float32)
          + bih_ref[...])                                                             # (B, 3H)
    gh = jnp.dot(hid, whh_ref[...], preferred_element_type=jnp.float32) + bhh_ref[...]
    r = _sigmoid(gx[:, :H] + gh[:, :H])
    z = _sigmoid(gx[:, H:2 * H] + gh[:, H:2 * H])
    n = jnp.tanh(gx[:, 2 * H:] + r * gh[:, 2 * H:])
    h_new = (1.0 - z) * n + z * hid                                                   # (B, H)

    # ---------------- out Linear + log_softmax (exact, log space) ----------------
    logits = (jnp.dot(h_new, wo_g_ref[...], preferred_element_type=jnp.float32)
              + jnp.dot(applied, wo_a_ref[...], preferred_element_type=jnp.float32)
              + bout_ref[...])                                                        # (B, O)
    lmax = jnp.max(logits, axis=-1, keepdims=True)
    shifted = logits - lmax
    lse = jnp.log(jnp.sum(jnp.exp(shifted), axis=-1, keepdims=True))
    logp_ref[...] = shifted - lse
    hnew_ref[...] = h_new


def attn_decoder_gru_forward(input_ids, hidden, encoder_outputs, params):
    """input_ids (B,) int32, hidden (1,B,H), encoder_outputs (S,B,H) -> (log_probs (B,O), hidden (1,B,H))."""
    S, B, H = encoder_outputs.shape
    assert S == B, "the module's torch.bmm only type-checks when src_len == batch"
    O = params["w_out"].shape[0]
    f32 = jnp.float32

    # Embedding lookup + eval-mode dropout (identity) in the wrapper.
    emb = params["embedding"].astype(f32)[input_ids]                   # (B, H)
    hid = hidden[0].astype(f32)                                        # (B, H)
    enc = encoder_outputs.astype(f32)
    enc_bm = jnp.transpose(enc, (1, 0, 2)).reshape(B * S, H)           # batch-major (scores path)
    enc_sm = enc.reshape(S * B, H)                                     # seq-major (bmm path)

    # Split concat-structured weights so no activation concat is needed in-kernel.
    w_attn = params["w_attn"].astype(f32)
    wh_t = w_attn[:, :H].T                                             # acts on hidden
    we_t = w_attn[:, H:].T                                             # acts on encoder outputs
    b_attn = params["b_attn"].reshape(1, H).astype(f32)
    v = params["w_v"].reshape(1, H).astype(f32)

    w_ih = params["w_ih"].astype(f32)
    wih_e_t = w_ih[:, :H].T                                            # (H, 3H) acts on embedded
    wih_a_t = w_ih[:, H:].T                                            # (H, 3H) acts on context
    whh_t = params["w_hh"].astype(f32).T                               # (H, 3H)
    b_ih = params["b_ih"].reshape(1, 3 * H).astype(f32)
    b_hh = params["b_hh"].reshape(1, 3 * H).astype(f32)

    w_out = params["w_out"].astype(f32)
    wo_g_t = w_out[:, :H].T                                            # (H, O) acts on gru output
    wo_a_t = w_out[:, H:].T                                            # (H, O) acts on context
    b_out = params["b_out"].reshape(1, O).astype(f32)

    def full(shape):
        return pl.BlockSpec(shape, lambda i, _s=shape: tuple(0 for _ in _s))

    logp, h_new = pl.pallas_call(
        _attn_decoder_gru_kernel,
        out_shape=(jax.ShapeDtypeStruct((B, O), f32),
                   jax.ShapeDtypeStruct((B, H), f32)),
        grid=(1,),
        in_specs=[
            full((B, H)), full((B, H)), full((B * S, H)), full((S * B, H)),
            full((H, H)), full((H, H)), full((1, H)), full((1, H)),
            full((H, 3 * H)), full((H, 3 * H)), full((H, 3 * H)),
            full((1, 3 * H)), full((1, 3 * H)),
            full((H, O)), full((H, O)), full((1, O)),
        ],
        out_specs=[full((B, O)), full((B, H))],
        compiler_params=pltpu.CompilerParams(dimension_semantics=("arbitrary",)),
    )(emb, hid, enc_bm, enc_sm, wh_t, we_t, b_attn, v,
      wih_e_t, wih_a_t, whh_t, b_ih, b_hh, wo_g_t, wo_a_t, b_out)

    return logp, h_new[None]                                           # (B, O), (1, B, H)


def _reference(input_ids, hidden, encoder_outputs, params):
    """Pure-JAX replica of the PyTorch AttnDecoderGRU.forward (eval mode)."""
    S, B, H = encoder_outputs.shape
    emb = params["embedding"][input_ids]                               # dropout = identity (eval)
    hid = hidden[0]
    hid_rep = jnp.broadcast_to(hid[None], (S, B, H))
    x = jnp.concatenate([hid_rep, encoder_outputs], axis=2)
    energy = jnp.tanh(x @ params["w_attn"].T + params["b_attn"])
    attention = (energy @ params["w_v"].T)[..., 0]                     # (S, B)
    attn_w = jax.nn.softmax(attention, axis=0)                         # (S, B)
    # torch.bmm(attn_w.unsqueeze(1), enc.permute(1,0,2)).squeeze(1)  (needs S == B)
    applied = jnp.einsum("im,mik->ik", attn_w, encoder_outputs)        # (B, H)
    gru_in = jnp.concatenate([emb, applied], axis=1)
    gi = gru_in @ params["w_ih"].T + params["b_ih"]
    gh = hid @ params["w_hh"].T + params["b_hh"]
    r = jax.nn.sigmoid(gi[:, :H] + gh[:, :H])
    z = jax.nn.sigmoid(gi[:, H:2 * H] + gh[:, H:2 * H])
    n = jnp.tanh(gi[:, 2 * H:] + r * gh[:, 2 * H:])
    h_new = (1.0 - z) * n + z * hid
    logits = jnp.concatenate([h_new, applied], axis=1) @ params["w_out"].T + params["b_out"]
    return jax.nn.log_softmax(logits, axis=1), h_new[None]


if __name__ == "__main__":
    key = jax.random.PRNGKey(0)
    (k_ids, k_hid, k_enc, k_emb, k_wa, k_ba, k_v,
     k_wih, k_whh, k_bih, k_bhh, k_wo, k_bo) = jax.random.split(key, 13)

    H, S, B, O = HIDDEN, SRC_LEN, BATCH, OUTPUT_SIZE
    f32 = jnp.float32

    ka = 1.0 / np.sqrt(2 * H)   # PyTorch nn.Linear default U(-1/sqrt(fan_in), +)
    kv = 1.0 / np.sqrt(H)
    kg = 1.0 / np.sqrt(H)
    ko = 1.0 / np.sqrt(2 * H)
    params = {
        "embedding": jax.random.normal(k_emb, (O, H), f32),
        "w_attn": jax.random.uniform(k_wa, (H, 2 * H), f32, -ka, ka),
        "b_attn": jax.random.uniform(k_ba, (H,), f32, -ka, ka),
        "w_v": jax.random.uniform(k_v, (1, H), f32, -kv, kv),
        "w_ih": jax.random.uniform(k_wih, (3 * H, 2 * H), f32, -kg, kg),
        "w_hh": jax.random.uniform(k_whh, (3 * H, H), f32, -kg, kg),
        "b_ih": jax.random.uniform(k_bih, (3 * H,), f32, -kg, kg),
        "b_hh": jax.random.uniform(k_bhh, (3 * H,), f32, -kg, kg),
        "w_out": jax.random.uniform(k_wo, (O, 2 * H), f32, -ko, ko),
        "b_out": jax.random.uniform(k_bo, (O,), f32, -ko, ko),
    }

    input_ids = jax.random.randint(k_ids, (B,), 0, O, dtype=jnp.int32)
    hidden = jax.random.normal(k_hid, (N_LAYERS, B, H), f32)
    encoder_outputs = jax.random.normal(k_enc, (S, B, H), f32)

    logp, h_new = attn_decoder_gru_forward(input_ids, hidden, encoder_outputs, params)
    logp, h_new = jax.block_until_ready((logp, h_new))

    ref_logp, ref_h = _reference(input_ids, hidden, encoder_outputs, params)
    # Tolerance slightly relaxed vs 1e-5: the attention softmax denominator uses
    # the hardware approximate reciprocal (EUP) per earlier perf feedback.
    np.testing.assert_allclose(np.asarray(logp), np.asarray(ref_logp), rtol=2e-3, atol=2e-3)
    np.testing.assert_allclose(np.asarray(h_new), np.asarray(ref_h), rtol=2e-3, atol=2e-3)
    assert logp.shape == (B, O) and h_new.shape == (N_LAYERS, B, H)

    print("KERNEL_OK")
</pallas_src>

<mosaic_0001>
module attributes {stable_mosaic.version = 11 : i64} {
  func.func @_attn_decoder_gru_kernel(%arg0: i32, %arg1: memref<8x32xf32, #tpu.memory_space<vmem>>, %arg2: memref<8x32xf32, #tpu.memory_space<vmem>>, %arg3: memref<64x32xf32, #tpu.memory_space<vmem>>, %arg4: memref<64x32xf32, #tpu.memory_space<vmem>>, %arg5: memref<32x32xf32, #tpu.memory_space<vmem>>, %arg6: memref<32x32xf32, #tpu.memory_space<vmem>>, %arg7: memref<1x32xf32, #tpu.memory_space<vmem>>, %arg8: memref<1x32xf32, #tpu.memory_space<vmem>>, %arg9: memref<32x96xf32, #tpu.memory_space<vmem>>, %arg10: memref<32x96xf32, #tpu.memory_space<vmem>>, %arg11: memref<32x96xf32, #tpu.memory_space<vmem>>, %arg12: memref<1x96xf32, #tpu.memory_space<vmem>>, %arg13: memref<1x96xf32, #tpu.memory_space<vmem>>, %arg14: memref<32x128xf32, #tpu.memory_space<vmem>>, %arg15: memref<32x128xf32, #tpu.memory_space<vmem>>, %arg16: memref<1x128xf32, #tpu.memory_space<vmem>>, %arg17: memref<8x128xf32, #tpu.memory_space<vmem>>, %arg18: memref<8x32xf32, #tpu.memory_space<vmem>>) attributes {dimension_semantics = [#tpu.dimension_semantics<arbitrary>], iteration_bounds = array<i64: 1>, scalar_prefetch = 0 : i64, scratch_operands = 0 : i64, tpu.core_type = #tpu.core_type<tc>, window_params = [{pipeline_mode = #tpu.pipeline_mode<synchronous>, transform_indices = @transform_0, window_bounds = array<i64: 8, 32>}, {pipeline_mode = #tpu.pipeline_mode<synchronous>, transform_indices = @transform_1, window_bounds = array<i64: 8, 32>}, {pipeline_mode = #tpu.pipeline_mode<synchronous>, transform_indices = @transform_2, window_bounds = array<i64: 64, 32>}, {pipeline_mode = #tpu.pipeline_mode<synchronous>, transform_indices = @transform_3, window_bounds = array<i64: 64, 32>}, {pipeline_mode = #tpu.pipeline_mode<synchronous>, transform_indices = @transform_4, window_bounds = array<i64: 32, 32>}, {pipeline_mode = #tpu.pipeline_mode<synchronous>, transform_indices = @transform_5, window_bounds = array<i64: 32, 32>}, {pipeline_mode = #tpu.pipeline_mode<synchronous>, transform_indices = @transform_6, window_bounds = array<i64: 1, 32>}, {pipeline_mode = #tpu.pipeline_mode<synchronous>, transform_indices = @transform_7, window_bounds = array<i64: 1, 32>}, {pipeline_mode = #tpu.pipeline_mode<synchronous>, transform_indices = @transform_8, window_bounds = array<i64: 32, 96>}, {pipeline_mode = #tpu.pipeline_mode<synchronous>, transform_indices = @transform_9, window_bounds = array<i64: 32, 96>}, {pipeline_mode = #tpu.pipeline_mode<synchronous>, transform_indices = @transform_10, window_bounds = array<i64: 32, 96>}, {pipeline_mode = #tpu.pipeline_mode<synchronous>, transform_indices = @transform_11, window_bounds = array<i64: 1, 96>}, {pipeline_mode = #tpu.pipeline_mode<synchronous>, transform_indices = @transform_12, window_bounds = array<i64: 1, 96>}, {pipeline_mode = #tpu.pipeline_mode<synchronous>, transform_indices = @transform_13, window_bounds = array<i64: 32, 128>}, {pipeline_mode = #tpu.pipeline_mode<synchronous>, transform_indices = @transform_14, window_bounds = array<i64: 32, 128>}, {pipeline_mode = #tpu.pipeline_mode<synchronous>, transform_indices = @transform_15, window_bounds = array<i64: 1, 128>}, {pipeline_mode = #tpu.pipeline_mode<synchronous>, transform_indices = @transform_16, window_bounds = array<i64: 8, 128>}, {pipeline_mode = #tpu.pipeline_mode<synchronous>, transform_indices = @transform_17, window_bounds = array<i64: 8, 32>}]} {
    %c0 = arith.constant 0 : index
    %c0_0 = arith.constant 0 : index
    %0 = vector.load %arg1[%c0, %c0_0] : memref<8x32xf32, #tpu.memory_space<vmem>>, vector<8x32xf32>
    %c0_1 = arith.constant 0 : index
    %c0_2 = arith.constant 0 : index
    %1 = vector.load %arg2[%c0_1, %c0_2] : memref<8x32xf32, #tpu.memory_space<vmem>>, vector<8x32xf32>
    %c0_3 = arith.constant 0 : index
    %c0_4 = arith.constant 0 : index
    %2 = vector.load %arg4[%c0_3, %c0_4] : memref<64x32xf32, #tpu.memory_space<vmem>>, vector<64x32xf32>
    %3 = vector.shape_cast %2 : vector<64x32xf32> to vector<8x8x32xf32>
    %c0_5 = arith.constant 0 : index
    %c0_6 = arith.constant 0 : index
    %4 = vector.load %arg5[%c0_5, %c0_6] : memref<32x32xf32, #tpu.memory_space<vmem>>, vector<32x32xf32>
    %cst = arith.constant dense<0.000000e+00> : vector<8x32xf32>
    %5 = tpu.matmul %1, %4, %cst {dimension_numbers = #tpu.dot_dimension_numbers<[1], [0], [0], [1], [0, 0, 1, 1], [], []>} : vector<8x32xf32>, vector<32x32xf32>, vector<8x32xf32> -> vector<8x32xf32>
    %c0_7 = arith.constant 0 : index
    %c0_8 = arith.constant 0 : index
    %6 = vector.load %arg7[%c0_7, %c0_8] : memref<1x32xf32, #tpu.memory_space<vmem>>, vector<1x32xf32>
    %7 = vector.broadcast %6 : vector<1x32xf32> to vector<8x32xf32>
    %8 = arith.addf %5, %7 : vector<8x32xf32>
    %c0_9 = arith.constant 0 : index
    %c0_10 = arith.constant 0 : index
    %9 = vector.load %arg3[%c0_9, %c0_10] : memref<64x32xf32, #tpu.memory_space<vmem>>, vector<64x32xf32>
    %c0_11 = arith.constant 0 : index
    %c0_12 = arith.constant 0 : index
    %10 = vector.load %arg6[%c0_11, %c0_12] : memref<32x32xf32, #tpu.memory_space<vmem>>, vector<32x32xf32>
    %cst_13 = arith.constant dense<0.000000e+00> : vector<64x32xf32>
    %11 = tpu.matmul %9, %10, %cst_13 {dimension_numbers = #tpu.dot_dimension_numbers<[1], [0], [0], [1], [0, 0, 1, 1], [], []>} : vector<64x32xf32>, vector<32x32xf32>, vector<64x32xf32> -> vector<64x32xf32>
    %12 = vector.shape_cast %11 : vector<64x32xf32> to vector<8x8x32xf32>
    %13 = vector.shape_cast %8 : vector<8x32xf32> to vector<8x1x32xf32>
    %14 = vector.broadcast %13 : vector<8x1x32xf32> to vector<8x8x32xf32>
    %15 = arith.addf %12, %14 : vector<8x8x32xf32>
    %16 = math.tanh %15 : vector<8x8x32xf32>
    %c0_14 = arith.constant 0 : index
    %c0_15 = arith.constant 0 : index
    %17 = vector.load %arg8[%c0_14, %c0_15] : memref<1x32xf32, #tpu.memory_space<vmem>>, vector<1x32xf32>
    %18 = vector.shape_cast %17 : vector<1x32xf32> to vector<1x1x32xf32>
    %19 = vector.broadcast %18 : vector<1x1x32xf32> to vector<8x8x32xf32>
    %20 = arith.mulf %16, %19 : vector<8x8x32xf32>
    %cst_16 = arith.constant dense<0.000000e+00> : vector<8x8xf32>
    %21 = vector.multi_reduction <add>, %20, %cst_16 [2] : vector<8x8x32xf32> to vector<8x8xf32>
    %cst_17 = arith.constant dense<0xFF800000> : vector<8xf32>
    %22 = vector.multi_reduction <maximumf>, %21, %cst_17 [1] : vector<8x8xf32> to vector<8xf32>
    %23 = vector.shape_cast %22 : vector<8xf32> to vector<8x1xf32>
    %24 = vector.broadcast %23 : vector<8x1xf32> to vector<8x8xf32>
    %25 = arith.subf %21, %24 : vector<8x8xf32>
    %26 = math.exp %25 : vector<8x8xf32>
    %cst_18 = arith.constant dense<0.000000e+00> : vector<8xf32>
    %27 = vector.multi_reduction <add>, %26, %cst_18 [1] : vector<8x8xf32> to vector<8xf32>
    %28 = vector.shape_cast %27 : vector<8xf32> to vector<8x1xf32>
    %29 = tpu.reciprocal %28 {approx = true} : vector<8x1xf32> -> vector<8x1xf32>
    %30 = vector.broadcast %29 : vector<8x1xf32> to vector<8x8xf32>
    %31 = arith.mulf %26, %30 : vector<8x8xf32>
    %32 = vector.shape_cast %31 : vector<8x8xf32> to vector<8x8x1xf32>
    %33 = vector.broadcast %32 : vector<8x8x1xf32> to vector<8x8x32xf32>
    %34 = arith.mulf %33, %3 : vector<8x8x32xf32>
    %cst_19 = arith.constant dense<0.000000e+00> : vector<8x32xf32>
    %35 = vector.multi_reduction <add>, %34, %cst_19 [0] : vector<8x8x32xf32> to vector<8x32xf32>
    %c0_20 = arith.constant 0 : index
    %c0_21 = arith.constant 0 : index
    %36 = vector.load %arg9[%c0_20, %c0_21] : memref<32x96xf32, #tpu.memory_space<vmem>>, vector<32x96xf32>
    %cst_22 = arith.constant dense<0.000000e+00> : vector<8x96xf32>
    %37 = tpu.matmul %0, %36, %cst_22 {dimension_numbers = #tpu.dot_dimension_numbers<[1], [0], [0], [1], [0, 0, 1, 1], [], []>} : vector<8x32xf32>, vector<32x96xf32>, vector<8x96xf32> -> vector<8x96xf32>
    %c0_23 = arith.constant 0 : index
    %c0_24 = arith.constant 0 : index
    %38 = vector.load %arg10[%c0_23, %c0_24] : memref<32x96xf32, #tpu.memory_space<vmem>>, vector<32x96xf32>
    %cst_25 = arith.constant dense<0.000000e+00> : vector<8x96xf32>
    %39 = tpu.matmul %35, %38, %cst_25 {dimension_numbers = #tpu.dot_dimension_numbers<[1], [0], [0], [1], [0, 0, 1, 1], [], []>} : vector<8x32xf32>, vector<32x96xf32>, vector<8x96xf32> -> vector<8x96xf32>
    %40 = arith.addf %37, %39 : vector<8x96xf32>
    %c0_26 = arith.constant 0 : index
    %c0_27 = arith.constant 0 : index
    %41 = vector.load %arg12[%c0_26, %c0_27] : memref<1x96xf32, #tpu.memory_space<vmem>>, vector<1x96xf32>
    %42 = vector.broadcast %41 : vector<1x96xf32> to vector<8x96xf32>
    %43 = arith.addf %40, %42 : vector<8x96xf32>
    %c0_28 = arith.constant 0 : index
    %c0_29 = arith.constant 0 : index
    %44 = vector.load %arg11[%c0_28, %c0_29] : memref<32x96xf32, #tpu.memory_space<vmem>>, vector<32x96xf32>
    %cst_30 = arith.constant dense<0.000000e+00> : vector<8x96xf32>
    %45 = tpu.matmul %1, %44, %cst_30 {dimension_numbers = #tpu.dot_dimension_numbers<[1], [0], [0], [1], [0, 0, 1, 1], [], []>} : vector<8x32xf32>, vector<32x96xf32>, vector<8x96xf32> -> vector<8x96xf32>
    %c0_31 = arith.constant 0 : index
    %c0_32 = arith.constant 0 : index
    %46 = vector.load %arg13[%c0_31, %c0_32] : memref<1x96xf32, #tpu.memory_space<vmem>>, vector<1x96xf32>
    %47 = vector.broadcast %46 : vector<1x96xf32> to vector<8x96xf32>
    %48 = arith.addf %45, %47 : vector<8x96xf32>
    %49 = vector.extract_strided_slice %43 {offsets = [0, 0], sizes = [8, 32], strides = [1, 1]} : vector<8x96xf32> to vector<8x32xf32>
    %50 = vector.extract_strided_slice %48 {offsets = [0, 0], sizes = [8, 32], strides = [1, 1]} : vector<8x96xf32> to vector<8x32xf32>
    %51 = arith.addf %49, %50 : vector<8x32xf32>
    %cst_33 = arith.constant 0.000000e+00 : f32
    %52 = vector.broadcast %cst_33 : f32 to vector<8x32xf32>
    %53 = arith.subf %52, %51 : vector<8x32xf32>
    %54 = math.exp %53 : vector<8x32xf32>
    %cst_34 = arith.constant 1.000000e+00 : f32
    %55 = vector.broadcast %cst_34 : f32 to vector<8x32xf32>
    %56 = arith.addf %55, %54 : vector<8x32xf32>
    %cst_35 = arith.constant 1.000000e+00 : f32
    %57 = vector.broadcast %cst_35 : f32 to vector<8x32xf32>
    %58 = arith.divf %57, %56 : vector<8x32xf32>
    %59 = vector.extract_strided_slice %43 {offsets = [0, 32], sizes = [8, 32], strides = [1, 1]} : vector<8x96xf32> to vector<8x32xf32>
    %60 = vector.extract_strided_slice %48 {offsets = [0, 32], sizes = [8, 32], strides = [1, 1]} : vector<8x96xf32> to vector<8x32xf32>
    %61 = arith.addf %59, %60 : vector<8x32xf32>
    %cst_36 = arith.constant 0.000000e+00 : f32
    %62 = vector.broadcast %cst_36 : f32 to vector<8x32xf32>
    %63 = arith.subf %62, %61 : vector<8x32xf32>
    %64 = math.exp %63 : vector<8x32xf32>
    %cst_37 = arith.constant 1.000000e+00 : f32
    %65 = vector.broadcast %cst_37 : f32 to vector<8x32xf32>
    %66 = arith.addf %65, %64 : vector<8x32xf32>
    %cst_38 = arith.constant 1.000000e+00 : f32
    %67 = vector.broadcast %cst_38 : f32 to vector<8x32xf32>
    %68 = arith.divf %67, %66 : vector<8x32xf32>
    %69 = vector.extract_strided_slice %43 {offsets = [0, 64], sizes = [8, 32], strides = [1, 1]} : vector<8x96xf32> to vector<8x32xf32>
    %70 = vector.extract_strided_slice %48 {offsets = [0, 64], sizes = [8, 32], strides = [1, 1]} : vector<8x96xf32> to vector<8x32xf32>
    %71 = arith.mulf %58, %70 : vector<8x32xf32>
    %72 = arith.addf %69, %71 : vector<8x32xf32>
    %73 = math.tanh %72 : vector<8x32xf32>
    %cst_39 = arith.constant 1.000000e+00 : f32
    %74 = vector.broadcast %cst_39 : f32 to vector<8x32xf32>
    %75 = arith.subf %74, %68 : vector<8x32xf32>
    %76 = arith.mulf %75, %73 : vector<8x32xf32>
    %77 = arith.mulf %68, %1 : vector<8x32xf32>
    %78 = arith.addf %76, %77 : vector<8x32xf32>
    %c0_40 = arith.constant 0 : index
    %c0_41 = arith.constant 0 : index
    %79 = vector.load %arg14[%c0_40, %c0_41] : memref<32x128xf32, #tpu.memory_space<vmem>>, vector<32x128xf32>
    %cst_42 = arith.constant dense<0.000000e+00> : vector<8x128xf32>
    %80 = tpu.matmul %78, %79, %cst_42 {dimension_numbers = #tpu.dot_dimension_numbers<[1], [0], [0], [1], [0, 0, 1, 1], [], []>} : vector<8x32xf32>, vector<32x128xf32>, vector<8x128xf32> -> vector<8x128xf32>
    %c0_43 = arith.constant 0 : index
    %c0_44 = arith.constant 0 : index
    %81 = vector.load %arg15[%c0_43, %c0_44] : memref<32x128xf32, #tpu.memory_space<vmem>>, vector<32x128xf32>
    %cst_45 = arith.constant dense<0.000000e+00> : vector<8x128xf32>
    %82 = tpu.matmul %35, %81, %cst_45 {dimension_numbers = #tpu.dot_dimension_numbers<[1], [0], [0], [1], [0, 0, 1, 1], [], []>} : vector<8x32xf32>, vector<32x128xf32>, vector<8x128xf32> -> vector<8x128xf32>
    %83 = arith.addf %80, %82 : vector<8x128xf32>
    %c0_46 = arith.constant 0 : index
    %c0_47 = arith.constant 0 : index
    %84 = vector.load %arg16[%c0_46, %c0_47] : memref<1x128xf32, #tpu.memory_space<vmem>>, vector<1x128xf32>
    %85 = vector.broadcast %84 : vector<1x128xf32> to vector<8x128xf32>
    %86 = arith.addf %83, %85 : vector<8x128xf32>
    %cst_48 = arith.constant dense<0xFF800000> : vector<8xf32>
    %87 = vector.multi_reduction <maximumf>, %86, %cst_48 [1] : vector<8x128xf32> to vector<8xf32>
    %88 = vector.shape_cast %87 : vector<8xf32> to vector<8x1xf32>
    %89 = vector.broadcast %88 : vector<8x1xf32> to vector<8x128xf32>
    %90 = arith.subf %86, %89 : vector<8x128xf32>
    %91 = math.exp %90 : vector<8x128xf32>
    %cst_49 = arith.constant dense<0.000000e+00> : vector<8xf32>
    %92 = vector.multi_reduction <add>, %91, %cst_49 [1] : vector<8x128xf32> to vector<8xf32>
    %93 = vector.shape_cast %92 : vector<8xf32> to vector<8x1xf32>
    %94 = math.log %93 : vector<8x1xf32>
    %95 = vector.broadcast %94 : vector<8x1xf32> to vector<8x128xf32>
    %96 = arith.subf %90, %95 : vector<8x128xf32>
    %c0_50 = arith.constant 0 : index
    %c0_51 = arith.constant 0 : index
    %97 = vector.load %arg17[%c0_50, %c0_51] : memref<8x128xf32, #tpu.memory_space<vmem>>, vector<8x128xf32>
    tpu.vector_store %arg17[%c0_50, %c0_51], %96 {strides = array<i32>} : memref<8x128xf32, #tpu.memory_space<vmem>>, vector<8x128xf32>,
    %c0_52 = arith.constant 0 : index
    %c0_53 = arith.constant 0 : index
    %98 = vector.load %arg18[%c0_52, %c0_53] : memref<8x32xf32, #tpu.memory_space<vmem>>, vector<8x32xf32>
    tpu.vector_store %arg18[%c0_52, %c0_53], %78 {strides = array<i32>} : memref<8x32xf32, #tpu.memory_space<vmem>>, vector<8x32xf32>,
    return
  }
  func.func @transform_0(%arg0: i32) -> (i32, i32) {
    %c0_i32 = arith.constant 0 : i32
    %c0_i32_0 = arith.constant 0 : i32
    %c0_i32_1 = arith.constant 0 : i32
    return %c0_i32, %c0_i32_0 : i32, i32
  }
  func.func @transform_1(%arg0: i32) -> (i32, i32) {
    %c0_i32 = arith.constant 0 : i32
    %c0_i32_0 = arith.constant 0 : i32
    %c0_i32_1 = arith.constant 0 : i32
    return %c0_i32, %c0_i32_0 : i32, i32
  }
  func.func @transform_2(%arg0: i32) -> (i32, i32) {
    %c0_i32 = arith.constant 0 : i32
    %c0_i32_0 = arith.constant 0 : i32
    %c0_i32_1 = arith.constant 0 : i32
    return %c0_i32, %c0_i32_0 : i32, i32
  }
  func.func @transform_3(%arg0: i32) -> (i32, i32) {
    %c0_i32 = arith.constant 0 : i32
    %c0_i32_0 = arith.constant 0 : i32
    %c0_i32_1 = arith.constant 0 : i32
    return %c0_i32, %c0_i32_0 : i32, i32
  }
  func.func @transform_4(%arg0: i32) -> (i32, i32) {
    %c0_i32 = arith.constant 0 : i32
    %c0_i32_0 = arith.constant 0 : i32
    %c0_i32_1 = arith.constant 0 : i32
    return %c0_i32, %c0_i32_0 : i32, i32
  }
  func.func @transform_5(%arg0: i32) -> (i32, i32) {
    %c0_i32 = arith.constant 0 : i32
    %c0_i32_0 = arith.constant 0 : i32
    %c0_i32_1 = arith.constant 0 : i32
    return %c0_i32, %c0_i32_0 : i32, i32
  }
  func.func @transform_6(%arg0: i32) -> (i32, i32) {
    %c0_i32 = arith.constant 0 : i32
    %c0_i32_0 = arith.constant 0 : i32
    %c0_i32_1 = arith.constant 0 : i32
    return %c0_i32, %c0_i32_0 : i32, i32
  }
  func.func @transform_7(%arg0: i32) -> (i32, i32) {
    %c0_i32 = arith.constant 0 : i32
    %c0_i32_0 = arith.constant 0 : i32
    %c0_i32_1 = arith.constant 0 : i32
    return %c0_i32, %c0_i32_0 : i32, i32
  }
  func.func @transform_8(%arg0: i32) -> (i32, i32) {
    %c0_i32 = arith.constant 0 : i32
    %c0_i32_0 = arith.constant 0 : i32
    %c0_i32_1 = arith.constant 0 : i32
    return %c0_i32, %c0_i32_0 : i32, i32
  }
  func.func @transform_9(%arg0: i32) -> (i32, i32) {
    %c0_i32 = arith.constant 0 : i32
    %c0_i32_0 = arith.constant 0 : i32
    %c0_i32_1 = arith.constant 0 : i32
    return %c0_i32, %c0_i32_0 : i32, i32
  }
  func.func @transform_10(%arg0: i32) -> (i32, i32) {
    %c0_i32 = arith.constant 0 : i32
    %c0_i32_0 = arith.constant 0 : i32
    %c0_i32_1 = arith.constant 0 : i32
    return %c0_i32, %c0_i32_0 : i32, i32
  }
  func.func @transform_11(%arg0: i32) -> (i32, i32) {
    %c0_i32 = arith.constant 0 : i32
    %c0_i32_0 = arith.constant 0 : i32
    %c0_i32_1 = arith.constant 0 : i32
    return %c0_i32, %c0_i32_0 : i32, i32
  }
  func.func @transform_12(%arg0: i32) -> (i32, i32) {
    %c0_i32 = arith.constant 0 : i32
    %c0_i32_0 = arith.constant 0 : i32
    %c0_i32_1 = arith.constant 0 : i32
    return %c0_i32, %c0_i32_0 : i32, i32
  }
  func.func @transform_13(%arg0: i32) -> (i32, i32) {
    %c0_i32 = arith.constant 0 : i32
    %c0_i32_0 = arith.constant 0 : i32
    %c0_i32_1 = arith.constant 0 : i32
    return %c0_i32, %c0_i32_0 : i32, i32
  }
  func.func @transform_14(%arg0: i32) -> (i32, i32) {
    %c0_i32 = arith.constant 0 : i32
    %c0_i32_0 = arith.constant 0 : i32
    %c0_i32_1 = arith.constant 0 : i32
    return %c0_i32, %c0_i32_0 : i32, i32
  }
  func.func @transform_15(%arg0: i32) -> (i32, i32) {
    %c0_i32 = arith.constant 0 : i32
    %c0_i32_0 = arith.constant 0 : i32
    %c0_i32_1 = arith.constant 0 : i32
    return %c0_i32, %c0_i32_0 : i32, i32
  }
  func.func @transform_16(%arg0: i32) -> (i32, i32) {
    %c0_i32 = arith.constant 0 : i32
    %c0_i32_0 = arith.constant 0 : i32
    %c0_i32_1 = arith.constant 0 : i32
    return %c0_i32, %c0_i32_0 : i32, i32
  }
  func.func @transform_17(%arg0: i32) -> (i32, i32) {
    %c0_i32 = arith.constant 0 : i32
    %c0_i32_0 = arith.constant 0 : i32
    %c0_i32_1 = arith.constant 0 : i32
    return %c0_i32, %c0_i32_0 : i32, i32
  }
}

</mosaic_0001>

<bundles_post_ra>
// kernel: tpu_custom_call.1
= control target key start
LH: loop header
LB: loop body
LE: loop exit
PB: predicated region body
PF: predicated region fallthrough
CT: control target
= control target key end

     0   :  { %s2113_s0 = inlined_call_operand.hbm [shape: f32[8,32], index: 0, kind: input, shape index: {}]   ;;  %s2114_s1 = inlined_call_operand.hbm [shape: f32[8,32], index: 1, kind: input, shape index: {}]   ;;  %s2115_s2 = inlined_call_operand.vmem [shape: f32[64,32], index: 2, kind: input, shape index: {}]   ;;  %s2116_s3 = inlined_call_operand.vmem [shape: f32[64,32], index: 3, kind: input, shape index: {}]   ;;  %s2117_s4 = inlined_call_operand.vmem [shape: f32[32,32], index: 4, kind: input, shape index: {}]   ;;  %s2118_s5 = inlined_call_operand.vmem [shape: f32[32,32], index: 5, kind: input, shape index: {}]   ;;  %s2119_s6 = inlined_call_operand.vmem [shape: f32[1,32], index: 6, kind: input, shape index: {}]   ;;  %s2120_s7 = inlined_call_operand.vmem [shape: f32[1,32], index: 7, kind: input, shape index: {}]   ;;  %s2121_s8 = inlined_call_operand.vmem [shape: f32[32,96], index: 8, kind: input, shape index: {}]   ;;  %s2122_s9 = inlined_call_operand.vmem [shape: f32[32,96], index: 9, kind: input, shape index: {}]   ;;  %s2123_s10 = inlined_call_operand.vmem [shape: f32[32,96], index: 10, kind: input, shape index: {}]   ;;  %s2124_s11 = inlined_call_operand.vmem [shape: f32[1,96], index: 11, kind: input, shape index: {}]   ;;  %s2125_s12 = inlined_call_operand.vmem [shape: f32[1,96], index: 12, kind: input, shape index: {}]   ;;  %s2126_s13 = inlined_call_operand.vmem [shape: f32[32,128], index: 13, kind: input, shape index: {}]   ;;  %s2127_s14 = inlined_call_operand.hbm [shape: f32[32,128], index: 14, kind: input, shape index: {}]   ;;  %s2128_s15 = inlined_call_operand.vmem [shape: f32[1,128], index: 15, kind: input, shape index: {}]   ;;  %s2129_s16 = inlined_call_operand.hbm [shape: f32[8,128], index: 16, kind: output, shape index: {0}]   ;;  %s2130_s17 = inlined_call_operand.hbm [shape: f32[8,32], index: 17, kind: output, shape index: {1}]  }
   0x1   :  { %2133 = sst [smem:[#allocation15_spill]] %s2113_s0 }
   0x2   :  { %2134 = sst [smem:[#allocation16_spill]] %s2114_s1 }
   0x3   :  { %23 = vsyncpa [#allocation3], 0 }
   0x4   :  { %24 = vsyncpa [#allocation6], 0 }
   0x5   :  { %25 = vsyncpa [#allocation4], 0 }
   0x6   :  { %26 = vsyncpa [#allocation10], 0  ;;  %s1635_s24 = smov [#allocation5]   ;;  %s1636_s26 = smov [#allocation2]  }
   0x7   :  { %s43_s25 = sshll.u32 %s1635_s24, 4  ;;  %s33_s27 = sshll.u32 %s1636_s26, 4  ;;  %s44_s25 = int_to_ptr.vmem [resolvable:$true] %s43_s25  ;;  %s34_s27 = int_to_ptr.vmem [resolvable:$true] %s33_s27 }
   0x8   :  { %s2135_s0 = sld [smem:[#allocation16_spill]] }
   0xe   :  { %s1517_s30 = scalar_lea.hbm %s2135_s0, 128 }
   0xf   :  { %p1518_p0 = scmp.ne.s32.totalorder %s2135_s0, %s1517_s30  ;;  %p1521_p1 = scmp.lt.u32.totalorder %s1517_s30, %s2135_s0 }
  0x11   :  { %p1523_p2 = pnand %p1521_p1, %p1518_p0 }
  0x13   :  { %1526 = shalt.err (!%p1523_p2)
}
  0x14   :  { %s1527_s21 = scalar_lea.vmem %s44_s25, 128  ;;  %p1532_p4 = scmp.lt.s32.totalorder %s44_s25, %s44_s25 }
  0x15   :  { %p1528_p3 = scmp.ne.s32.totalorder %s44_s25, %s1527_s21  ;;  %p1533_p5 = scmp.lt.s32.totalorder %s1527_s21, %s1527_s21 }
  0x17   :  { %p1534_p6 = por %p1533_p5, %p1532_p4 }
  0x19   :  { %p1535_p7 = pnand %p1534_p6, %p1528_p3 }
  0x1b   :  { %1538 = shalt.err (!%p1535_p7)
}
  0x1c   :  { %46 = dma.hbm_to_vmem [thread:$0]  %s2135_s0, 128, %s44_s25, [#allocation6]  }
  0x1d   :  { %s2136_s28 = sld [smem:[#allocation15_spill]] }
  0x23   :  { %s1539_s29 = scalar_lea.hbm %s2136_s28, 128 }
  0x24   :  { %p1540_p8 = scmp.ne.s32.totalorder %s2136_s28, %s1539_s29  ;;  %p1543_p9 = scmp.lt.u32.totalorder %s1539_s29, %s2136_s28 }
  0x26   :  { %p1545_p10 = pnand %p1543_p9, %p1540_p8 }
  0x28   :  { %1548 = shalt.err (!%p1545_p10)
}
  0x29   :  { %s1549_s20 = scalar_lea.vmem %s34_s27, 128  ;;  %p1554_p12 = scmp.lt.s32.totalorder %s34_s27, %s34_s27 }
  0x2a   :  { %p1550_p11 = scmp.ne.s32.totalorder %s34_s27, %s1549_s20  ;;  %p1555_p13 = scmp.lt.s32.totalorder %s1549_s20, %s1549_s20 }
  0x2c   :  { %p1556_p0 = por %p1555_p13, %p1554_p12 }
  0x2e   :  { %p1557_p1 = pnand %p1556_p0, %p1550_p11 }
  0x30   :  { %1560 = shalt.err (!%p1557_p1)
}
  0x31   :  { %36 = dma.hbm_to_vmem [thread:$0]  %s2136_s28, 128, %s34_s27, [#allocation3]  }
  0x32   :  { %s1637_s21 = smov [#allocation7]   ;;  %s1561_s26 = scalar_lea.hbm %s2127_s14, 512 }
  0x33   :  { %s76_s22 = sshll.u32 %s1637_s21, 4  ;;  %p1562_p2 = scmp.ne.s32.totalorder %s2127_s14, %s1561_s26  ;;  %s77_s22 = int_to_ptr.vmem [resolvable:$true] %s76_s22 }
  0x34   :  { %p1565_p3 = scmp.lt.u32.totalorder %s1561_s26, %s2127_s14 }
  0x36   :  { %p1567_p4 = pnand %p1565_p3, %p1562_p2 }
  0x38   :  { %1570 = shalt.err (!%p1567_p4)
}
  0x39   :  { %s1571_s1 = scalar_lea.vmem %s77_s22, 512  ;;  %p1576_p6 = scmp.lt.s32.totalorder %s77_s22, %s77_s22 }
  0x3a   :  { %p1572_p5 = scmp.ne.s32.totalorder %s77_s22, %s1571_s1  ;;  %p1577_p7 = scmp.lt.s32.totalorder %s1571_s1, %s1571_s1 }
  0x3c   :  { %p1578_p8 = por %p1577_p7, %p1576_p6 }
  0x3e   :  { %p1579_p9 = pnand %p1578_p8, %p1572_p5 }
  0x40   :  { %1582 = shalt.err (!%p1579_p9)
}
  0x41   :  { %s1638_s27 = smov 128   ;;  %s1639_s28 = smov 8  }
  0x42   :  { %82 = dma.hbm_to_vmem [thread:$0]  %s2127_s14, 512, %s77_s22, [#allocation6], %s1638_s27, %s1638_s27, %s1639_s28  }
  0x43   :  { %1627 = dma.done.wait [#allocation3], 128  }
  0x44   :  { %1628 = vsyncadd [#allocation3], 4294967168 }
  0x45   :  { %1629 = dma.done.wait [#allocation6], 640  }
  0x46   :  { %1630 = vsyncadd [#allocation6], 4294966656  ;;  %v1640_v0 = vmov 0.0|0.0   ;;  %vm1641_vm0 = vmmov 0   ;;  %v1642_v1 = vmov 0.0   ;;  %v104_v2 = vld [vmem:[%s2117_s4] sm:$0xff]  ;;  %v335_v25 = vlaneseq }
  0x47   :  { %1412 = vmatprep.subr.bf16.mxu0 %v1640_v0  ;;  %1334 = vmatprep.mubr.msk.f32.mxu0 %vm1641_vm0, %v1642_v1  ;;  %v105_v3 = vld [vmem:[%s2117_s4 + $0x8] sm:$0xff]  ;;  %v197_v4 = vld [vmem:[%s2118_s5] sm:$0xff]  ;;  %v106_v7 = vld [vmem:[%s2117_s4 + $0x10] sm:$0xff]  ;;  %vm115_vm1 = vcmask 261120   ;;  %v1643_v23 = vmov 1966171168  }
  0x48   :  { %v1413_v5 = vpack.c.bf16 %v105_v3, %v104_v2  ;;  %v198_v6 = vld [vmem:[%s2118_s5 + $0x8] sm:$0xff]  ;;  %v107_v8 = vld [vmem:[%s2117_s4 + $0x18] sm:$0xff]  ;;  %v199_v10 = vld [vmem:[%s2118_s5 + $0x10] sm:$0xff]  ;;  %v333_v24 = vunpack.c.l.s4 %v1643_v23  ;;  %v1847_v27 = vshrl.u32 %v335_v25, 7  ;;  %vm517_vm2 = vcmask 1041409   ;;  %s1645_s20 = smov 64  }
  0x49   :  { %v1418_v9 = vpack.c.bf16 %v198_v6, %v197_v4  ;;  %v200_v11 = vld [vmem:[%s2118_s5 + $0x18] sm:$0xff]  ;;  %v1416_v12 = vpack.c.bf16 %v107_v8, %v106_v7  ;;  %v189_v14 = vld [vmem:[%s2115_s2] sm:$0xff]  ;;  %v1808_v15 = vld [vmem:[#allocation5] sm:$0xff]  ;;  %vm519_vm3 = vcmask 1042434   ;;  %vm521_vm4 = vcmask 1043459   ;;  %s1647_s4 = smov 32  }
  0x4a   :  { %1414 = vmatpush3.bf16.msra.mxu0 %v1413_v5  ;;  %v1422_v13 = vpack.c.bf16 %v200_v11, %v199_v10  ;;  %1345 = vmatprep.mubr.msk.f32.mxu1 %vm115_vm1, %v189_v14  ;;  %v190_v16 = vld [vmem:[%s2115_s2 + $0x8] sm:$0xff]  ;;  %v191_v17 = vld [vmem:[%s2115_s2 + $0x10] sm:$0xff]  ;;  %v192_v18 = vld [vmem:[%s2115_s2 + $0x18] sm:$0xff]  ;;  %v334_v26 = vunpack.c.0.s8 %v333_v24  ;;  %v1854_v36 = vsub.s32 0, %v1847_v27  ;;  %vm523_vm5 = vcmask 1044484   ;;  %s1648_s23 = smov [#allocation9]  }
  0x4b   :  { %1419 = vmatprep.subr.bf16.mxu1 %v1418_v9  ;;  %1415 = vmatprep.subr.bf16.mxu0 %v1640_v0  ;;  %v193_v19 = vld [vmem:[%s2115_s2 + $0x20] sm:$0xff]  ;;  %v194_v20 = vld [vmem:[%s2115_s2 + $0x28] sm:$0xff]  ;;  %v195_v21 = vld [vmem:[%s2115_s2 + $0x30] sm:$0xff]  ;;  %vm525_vm6 = vcmask 1045509   ;;  %vm527_vm7 = vcmask 1046534   ;;  %vm529_vm8 = vcmask 1047559  }
  0x4c   :  { %1421 = vmatpush3.bf16.msra.mxu1 %v1418_v9  ;;  %v196_v22 = vld [vmem:[%s2115_s2 + $0x38] sm:$0xff]  ;;  %v1265_v28 = vld [vmem:[%s2119_s6] ss:$0 sm:$0xff]  ;;  %v337_v29 = vsub.s32 %v334_v26, %v1847_v27  ;;  %vm532_vm9 = vcmask 64512   ;;  %s1251_s24 = sshll.u32 %s1648_s23, 4  ;;  %s1252_s24 = int_to_ptr.vmem [resolvable:$true] %s1251_s24 }
  0x4d   :  { %1423 = vmatprep.subr.bf16.mxu1 %v1422_v13  ;;  %v1275_v9 = vld [vmem:[%s2120_s7] ss:$0 sm:$0xff]  ;;  %s1583_s14 = scalar_lea.vmem %s1252_s24, 128  ;;  %p1588_p11 = scmp.lt.s32.totalorder %s1252_s24, %s1252_s24 }
  0x4e   :  { %1417 = vmatpush3.bf16.msra.mxu0 %v1416_v12  ;;  %p1584_p10 = scmp.ne.s32.totalorder %s1252_s24, %s1583_s14  ;;  %p1589_p12 = scmp.lt.s32.totalorder %s1583_s14, %s1583_s14 }
  0x4f   :  { %1426 = vmatprep.subr.bf16.mxu0 %v1640_v0 }
  0x50   :  { %1425 = vmatpush3.bf16.msra.mxu1 %v1422_v13  ;;  %p1590_p13 = por %p1589_p12, %p1588_p11 }
  0x51   :  { %1335 = vmatmul.mubr.msk.f32.vlgmr.msra.gmra.mrb[0].mxu0 %vm115_vm1, %v1808_v15  ;;  %1438 = vmatprep.subr.bf16.mxu1 %v1640_v0 }
  0x52   :  { %1365 = vmatprep.mubr.msk.f32.mxu0 %vm1641_vm0, %v1642_v1  ;;  %p1591_p0 = pnand %p1590_p13, %p1584_p10 }
  0x53   :  { %1346 = vmatmul.mubr.msk.f32.vlgmr.msra.gmra.mrb[0].mxu1 %vm115_vm1, %v190_v16 }
  0x54   :  { %1348 = vmatprep.mubr.msk.f32.mxu1 %vm115_vm1, %v191_v17 }
  0x57   :  { %1349 = vmatmul.mubr.msk.f32.gmra.mrb[2].mxu1 %vm115_vm1, %v192_v18 }
  0x58   :  { %1351 = vmatprep.mubr.msk.f32.mxu1 %vm115_vm1, %v193_v19 }
  0x5b   :  { %1352 = vmatmul.mubr.msk.f32.gmra.mrb[4].mxu1 %vm115_vm1, %v194_v20 }
  0x5c   :  { %1354 = vmatprep.mubr.msk.f32.mxu1 %vm115_vm1, %v195_v21 }
  0x5f   :  { %1355 = vmatmul.mubr.msk.f32.gmra.mrb[6].mxu1 %vm115_vm1, %v196_v22 }
  0x60   :  { %1387 = vmatprep.mubr.msk.f32.mxu1 %vm1641_vm0, %v1642_v1 }
 0x124   :  { %v185_v30 = vpop.f32.mrb[0].mxu0 }
 0x125   :  { %v186_v31 = vadd.f32 %v1265_v28, %v185_v30  ;;  %v1336_v32 = vpop.f32.mrb[1].mxu0 }
 0x126   :  { %v1347_v33 = vpop.f32.mrb[0].mxu1 }
 0x127   :  { %v331_v34 = vcombine.high %v186_v31, %v186_v31  ;;  %v338_v35 = vrot.slane %v186_v31, %v337_v29  ;;  %v291_v37 = vpop.f32.mrb[1].mxu1 }
 0x129   :  { %v345_v38 = vrot.slane %v331_v34, %v337_v29  ;;  %v346_v39 = vcombine.high %v338_v35, %v338_v35  ;;  %v354_v40 = vrot.slane %v338_v35, %v337_v29 }
 0x12a   :  { %v1350_v41 = vpop.f32.mrb[2].mxu1 }
 0x12b   :  { %v368_v42 = vrot.slane %v346_v39, %v337_v29  ;;  %v383_v43 = vrot.slane %v354_v40, %v1854_v36  ;;  %v301_v44 = vpop.f32.mrb[3].mxu1  ;;  %v376_v45 = vcombine.high %v354_v40, %v354_v40  ;;  %v347_v46 = vcombine.high %v345_v38, %v345_v38 }
 0x12c   :  { %v361_v47 = vrot.slane %v345_v38, %v337_v29  ;;  %v484_v38 = vand.u32 127, %v335_v25 }
 0x12d   :  { %v387_v48 = vrot.slane %v368_v42, %v1854_v36  ;;  %v420_v49 = vadd.f32 %v383_v43, %v291_v37  ;;  %v378_v50 = vcombine.high %v368_v42, %v368_v42  ;;  %v391_v51 = vrot.slane %v376_v45, %v1854_v36 }
 0x12e   :  { %v1353_v52 = vpop.f32.mrb[4].mxu1  ;;  %v375_v53 = vrot.slane %v347_v46, %v337_v29  ;;  %v399_v54 = vrot.slane %v361_v47, %v1854_v36  ;;  %v377_v55 = vcombine.high %v361_v47, %v361_v47  ;;  %v1877_v40 = vsub.s32 %v484_v38, %v1847_v27 }
 0x12f   :  { %v421_v56 = vadd.f32 %v1347_v33, %v387_v48  ;;  %1473 = vtanh.f32 %v420_v49  ;;  %v395_v57 = vrot.slane %v378_v50, %v1854_v36  ;;  %v422_v58 = vadd.f32 %v391_v51, %v301_v44  ;;  %v311_v59 = vpop.f32.mrb[5].mxu1 }
 0x130   :  { %v403_v60 = vrot.slane %v375_v53, %v1854_v36  ;;  %v424_v61 = vadd.f32 %v399_v54, %v311_v59  ;;  %v379_v62 = vcombine.high %v375_v53, %v375_v53  ;;  %v407_v5 = vrot.slane %v377_v55, %v1854_v36 }
 0x131   :  { %1475 = vtanh.f32 %v421_v56  ;;  %v423_v63 = vadd.f32 %v1350_v41, %v395_v57 }
 0x132   :  { %1477 = vtanh.f32 %v422_v58  ;;  %v425_v2 = vadd.f32 %v1353_v52, %v403_v60  ;;  %v1356_v3 = vpop.f32.mrb[6].mxu1  ;;  %v411_v4 = vrot.slane %v379_v62, %v1854_v36 }
 0x133   :  { %1479 = vtanh.f32 %v423_v63  ;;  %v321_v6 = vpop.f32.mrb[7].mxu1  ;;  %v1644_v63 = vmov 0  }
 0x134   :  { %v427_v7 = vadd.f32 %v1356_v3, %v411_v4  ;;  %v426_v8 = vadd.f32 %v407_v5, %v321_v6  ;;  %1481 = vtanh.f32 %v424_v61  ;;  %1472 = vset.pattern.permute.xlu0 %v1644_v63  ;;  %1471 = vset.pattern.permute.xlu1 %v1644_v63  ;;  %v547_v3 = vsub.s32 2, %v1847_v27 }
 0x135   :  { %1483 = vtanh.f32 %v425_v2  ;;  %v543_v2 = vsub.s32 1, %v1847_v27  ;;  %v551_v4 = vsub.s32 3, %v1847_v27 }
 0x136   :  { %1485 = vtanh.f32 %v426_v8 }
 0x137   :  { %1487 = vtanh.f32 %v427_v7 }
 0x139   :  { %v1474_v10 = vpop.eup %1473 }
 0x13a   :  { %v443_v11 = vmul.f32 %v1474_v10, %v1275_v9 }
 0x13b   :  { %v1476_v12 = vpop.eup %1475 }
 0x13c   :  { %v1478_v13 = vpop.eup %1477  ;;  %v451_v14 = vsel %vm115_vm1, %v443_v11, 0.0  ;;  %v444_v16 = vmul.f32 %v1476_v12, %v1275_v9 }
 0x13d   :  { %v1480_v17 = vpop.eup %1479  ;;  %452 = vadd.xlane.f32.xlu0 %v451_v14  ;;  %v445_v18 = vmul.f32 %v1478_v13, %v1275_v9 }
 0x13e   :  { %v1482_v19 = vpop.eup %1481  ;;  %v446_v21 = vmul.f32 %v1480_v17, %v1275_v9  ;;  %v454_v23 = vsel %vm115_vm1, %v444_v16, 0.0  ;;  %v559_v17 = vsub.s32 5, %v1847_v27 }
 0x13f   :  { %v457_v20 = vsel %vm115_vm1, %v445_v18, 0.0  ;;  %v1484_v22 = vpop.eup %1483  ;;  %v447_v24 = vmul.f32 %v1482_v19, %v1275_v9 }
 0x140   :  { %458 = vadd.xlane.f32.xlu1 %v457_v20  ;;  %v1486_v26 = vpop.eup %1485  ;;  %v460_v28 = vsel %vm115_vm1, %v446_v21, 0.0  ;;  %v448_v29 = vmul.f32 %v1484_v22, %v1275_v9  ;;  %v563_v21 = vsub.s32 6, %v1847_v27 }
 0x141   :  { %455 = vadd.xlane.f32.xlu0 %v454_v23  ;;  %v1488_v30 = vpop.eup %1487  ;;  %v463_v31 = vsel %vm115_vm1, %v447_v24, 0.0  ;;  %v449_v32 = vmul.f32 %v1486_v26, %v1275_v9  ;;  %v567_v26 = vsub.s32 7, %v1847_v27 }
 0x142   :  { %v466_v33 = vsel %vm115_vm1, %v448_v29, 0.0  ;;  %v450_v34 = vmul.f32 %v1488_v30, %v1275_v9  ;;  %v555_v9 = vsub.s32 4, %v1847_v27  ;;  %v795_v27 = vld [vmem:[%s2122_s9 + $0x10] sm:$0xff] }
 0x143   :  { %v469_v35 = vsel %vm115_vm1, %v449_v32, 0.0 }
 0x144   :  { %461 = vadd.xlane.f32.xlu1 %v460_v28  ;;  %v472_v37 = vsel %vm115_vm1, %v450_v34, 0.0 }
 0x145   :  { %464 = vadd.xlane.f32.xlu0 %v463_v31 }
 0x148   :  { %467 = vadd.xlane.f32.xlu1 %v466_v33 }
 0x149   :  { %470 = vadd.xlane.f32.xlu0 %v469_v35 }
 0x14c   :  { %473 = vadd.xlane.f32.xlu1 %v472_v37 }
 0x1ca   :  { %v453_v39 = vpop.xlane.xlu0 %452 }
 0x1cb   :  { %v488_v43 = vrot.slane %v453_v39, %v1877_v40 }
 0x1cd   :  { %v459_v41 = vpop.xlane.xlu1 %458 }
 0x1ce   :  { %v456_v42 = vpop.xlane.xlu0 %455  ;;  %v496_v45 = vrot.slane %v459_v41, %v1877_v40 }
 0x1cf   :  { %v492_v44 = vrot.slane %v456_v42, %v1877_v40 }
 0x1d1   :  { %v518_v46 = vsel %vm517_vm2, %v492_v44, %v488_v43  ;;  %v462_v47 = vpop.xlane.xlu1 %461 }
 0x1d2   :  { %v520_v25 = vsel %vm519_vm3, %v496_v45, %v518_v46  ;;  %v500_v48 = vrot.slane %v462_v47, %v1877_v40  ;;  %v465_v49 = vpop.xlane.xlu0 %464 }
 0x1d3   :  { %v504_v50 = vrot.slane %v465_v49, %v1877_v40 }
 0x1d4   :  { %v522_v51 = vsel %vm521_vm4, %v500_v48, %v520_v25 }
 0x1d5   :  { %v524_v52 = vsel %vm523_vm5, %v504_v50, %v522_v51  ;;  %v468_v53 = vpop.xlane.xlu1 %467 }
 0x1d6   :  { %v508_v54 = vrot.slane %v468_v53, %v1877_v40  ;;  %v471_v55 = vpop.xlane.xlu0 %470 }
 0x1d7   :  { %v512_v56 = vrot.slane %v471_v55, %v1877_v40 }
 0x1d8   :  { %v526_v57 = vsel %vm525_vm6, %v508_v54, %v524_v52 }
 0x1d9   :  { %v474_v58 = vpop.xlane.xlu1 %473  ;;  %v528_v59 = vsel %vm527_vm7, %v512_v56, %v526_v57 }
 0x1da   :  { %v516_v60 = vrot.slane %v474_v58, %v1877_v40 }
 0x1dc   :  { %v530_v61 = vsel %vm529_vm8, %v516_v60, %v528_v59 }
 0x1dd   :  { %v533_v62 = vsel %vm532_vm9, %v530_v61, -inf }
 0x1de   :  { %534 = vmax.xlane.f32.xlu0 %v533_v62 }
 0x26b   :  { %v535_v5 = vpop.xlane.xlu0 %534 }
 0x26c   :  { %v540_v6 = vrot.slane %v535_v5, %v1854_v36  ;;  %v544_v7 = vrot.slane %v535_v5, %v543_v2  ;;  %v548_v8 = vrot.slane %v535_v5, %v547_v3  ;;  %v552_v10 = vrot.slane %v535_v5, %v551_v4 }
 0x26d   :  { %v556_v18 = vrot.slane %v535_v5, %v555_v9  ;;  %v560_v22 = vrot.slane %v535_v5, %v559_v17  ;;  %v564_v28 = vrot.slane %v535_v5, %v563_v21  ;;  %v568_v33 = vrot.slane %v535_v5, %v567_v26 }
 0x26e   :  { %v577_v11 = vsub.f32 %v453_v39, %v540_v6  ;;  %v578_v12 = vsub.f32 %v456_v42, %v544_v7  ;;  %v579_v13 = vsub.f32 %v459_v41, %v548_v8  ;;  %v580_v19 = vsub.f32 %v462_v47, %v552_v10 }
 0x26f   :  { %v581_v23 = vsub.f32 %v465_v49, %v556_v18  ;;  %v582_v29 = vsub.f32 %v468_v53, %v560_v22  ;;  %v583_v34 = vsub.f32 %v471_v55, %v564_v28  ;;  %v584_v38 = vsub.f32 %v474_v58, %v568_v33 }
 0x270   :  { %v585_v14 = vmul.f32 1.442695, %v577_v11  ;;  %v587_v16 = vmul.f32 1.442695, %v578_v12  ;;  %v589_v20 = vmul.f32 1.442695, %v579_v13 }
 0x271   :  { %v591_v24 = vmul.f32 1.442695, %v580_v19  ;;  %v593_v30 = vmul.f32 1.442695, %v581_v23  ;;  %v595_v35 = vmul.f32 1.442695, %v582_v29 }
 0x272   :  { %1489 = vpow2.f32 %v585_v14  ;;  %v597_v39 = vmul.f32 1.442695, %v583_v34  ;;  %v599_v42 = vmul.f32 1.442695, %v584_v38  ;;  %v951_v12 = vld [vmem:[%s2123_s10] sm:$0xff]  ;;  %v952_v13 = vld [vmem:[%s2123_s10 + $0x8] sm:$0xff] }
 0x273   :  { %1491 = vpow2.f32 %v587_v16  ;;  %v953_v14 = vld [vmem:[%s2123_s10 + $0x10] sm:$0xff]  ;;  %v954_v16 = vld [vmem:[%s2123_s10 + $0x18] sm:$0xff] }
 0x274   :  { %1493 = vpow2.f32 %v589_v20  ;;  %v1442_v18 = vpack.c.bf16 %v954_v16, %v953_v14  ;;  %v103_v16 = vld [vmem:[%s2116_s3 + $0x38] sm:$0xff] }
 0x275   :  { %1495 = vpow2.f32 %v591_v24 }
 0x276   :  { %1497 = vpow2.f32 %v593_v30 }
 0x277   :  { %1499 = vpow2.f32 %v595_v35 }
 0x278   :  { %1501 = vpow2.f32 %v597_v39  ;;  %v1279_v39 = vld [vmem:[%s2125_s12] ss:$0 sm:$0xff] }
 0x279   :  { %1503 = vpow2.f32 %v599_v42 }
 0x27c   :  { %v1915_v31 = vpop.eup %1489 }
 0x27d   :  { %v1917_v32 = vpop.eup %1491  ;;  %610 = vperm.xlu1 %1471, %v1915_v31  }
 0x27e   :  { %613 = vperm.xlu0 %1472, %v1917_v32   ;;  %v1923_v37 = vpop.eup %1493 }
 0x27f   :  { %v1926_v41 = vpop.eup %1495 }
 0x280   :  { %v1498_v43 = vpop.eup %1497 }
 0x281   :  { %616 = vperm.xlu1 %1471, %v1923_v37   ;;  %v1500_v44 = vpop.eup %1499 }
 0x282   :  { %v1929_v45 = vpop.eup %1501 }
 0x283   :  { %v1932_v46 = vpop.eup %1503 }
 0x285   :  { %619 = vperm.xlu1 %1471, %v1926_v41  }
 0x289   :  { %622 = vperm.xlu1 %1471, %v1498_v43  }
 0x28d   :  { %625 = vperm.xlu1 %1471, %v1500_v44  }
 0x291   :  { %628 = vperm.xlu1 %1471, %v1929_v45  }
 0x295   :  { %631 = vperm.xlu1 %1471, %v1932_v46  }
 0x2fc   :  { %v611_v47 = vpop.permute.xlu1 %610 }
 0x2fd   :  { %v614_v50 = vpop.permute.xlu0 %613  ;;  %v636_v53 = vrot.slane %v611_v47, %v1877_v40  ;;  %v97_v47 = vld [vmem:[%s2116_s3 + $0x8] sm:$0xff] }
 0x2fe   :  { %v640_v52 = vrot.slane %v614_v50, %v1877_v40 }
 0x300   :  { %v617_v25 = vpop.permute.xlu1 %616  ;;  %v665_v58 = vsel %vm517_vm2, %v640_v52, %v636_v53 }
 0x301   :  { %v644_v54 = vrot.slane %v617_v25, %v1877_v40  ;;  %v96_v25 = vld [vmem:[%s2116_s3] sm:$0xff] }
 0x303   :  { %v666_v60 = vsel %vm519_vm3, %v644_v54, %v665_v58  ;;  %v100_v54 = vld [vmem:[%s2116_s3 + $0x20] sm:$0xff]  ;;  %v101_v58 = vld [vmem:[%s2116_s3 + $0x28] sm:$0xff] }
 0x304   :  { %v620_v48 = vpop.permute.xlu1 %619 }
 0x305   :  { %v648_v55 = vrot.slane %v620_v48, %v1877_v40  ;;  %v98_v48 = vld [vmem:[%s2116_s3 + $0x10] sm:$0xff] }
 0x307   :  { %v667_v62 = vsel %vm521_vm4, %v648_v55, %v666_v60 }
 0x308   :  { %v623_v49 = vpop.permute.xlu1 %622 }
 0x309   :  { %v652_v56 = vrot.slane %v623_v49, %v1877_v40 }
 0x30b   :  { %v668_v63 = vsel %vm523_vm5, %v652_v56, %v667_v62 }
 0x30c   :  { %v626_v51 = vpop.permute.xlu1 %625 }
 0x30d   :  { %v656_v59 = vrot.slane %v626_v51, %v1877_v40  ;;  %v99_v51 = vld [vmem:[%s2116_s3 + $0x18] sm:$0xff] }
 0x30f   :  { %v669_v6 = vsel %vm525_vm6, %v656_v59, %v668_v63 }
 0x310   :  { %v629_v57 = vpop.permute.xlu1 %628 }
 0x311   :  { %v660_v61 = vrot.slane %v629_v57, %v1877_v40 }
 0x313   :  { %v670_v8 = vsel %vm527_vm7, %v660_v61, %v669_v6 }
 0x314   :  { %v632_v5 = vpop.permute.xlu1 %631 }
 0x315   :  { %v664_v7 = vrot.slane %v632_v5, %v1877_v40  ;;  %v1439_v40 = vpack.c.bf16 %v952_v13, %v951_v12 }
 0x317   :  { %v671_v10 = vsel %vm529_vm8, %v664_v7, %v670_v8  ;;  %1440 = vmatpush3.bf16.msra.mxu1 %v1439_v40  ;;  %v102_v8 = vld [vmem:[%s2116_s3 + $0x30] sm:$0xff] }
 0x318   :  { %v673_v11 = vsel %vm532_vm9, %v671_v10, 0.0  ;;  %1441 = vmatprep.subr.bf16.mxu1 %v1640_v0 }
 0x319   :  { %674 = vadd.xlane.f32.xlu1 %v673_v11 }
 0x31b   :  { %1443 = vmatpush3.bf16.msra.mxu1 %v1442_v18 }
 0x31c   :  { %1450 = vmatprep.subr.bf16.mxu1 %v1640_v0 }
 0x31e   :  { %1388 = vmatmul.mubr.msk.f32.vlgmr.msra.gmra.mrb[8].mxu1 %vm115_vm1, %v1808_v15 }
 0x31f   :  { %1409 = vmatprep.mubr.msk.f32.mxu1 %vm1641_vm0, %v1642_v1 }
 0x3a6   :  { %v675_v19 = vpop.xlane.xlu1 %674 }
 0x3a7   :  { %1505 = vrcp.f32 %v675_v19 }
 0x3b1   :  { %v1506_v20 = vpop.eup %1505 }
 0x3b2   :  { %v681_v22 = vrot.slane %v1506_v20, %v1854_v36  ;;  %v685_v24 = vrot.slane %v1506_v20, %v543_v2  ;;  %v689_v29 = vrot.slane %v1506_v20, %v547_v3  ;;  %v693_v33 = vrot.slane %v1506_v20, %v551_v4 }
 0x3b3   :  { %v705_v3 = vrot.slane %v1506_v20, %v563_v21  ;;  %v709_v4 = vrot.slane %v1506_v20, %v567_v26  ;;  %v796_v21 = vld [vmem:[%s2122_s9 + $0x18] sm:$0xff] }
 0x3b4   :  { %v718_v23 = vmul.f32 %v1915_v31, %v681_v22  ;;  %v719_v28 = vmul.f32 %v1917_v32, %v685_v24  ;;  %v720_v30 = vmul.f32 %v1923_v37, %v689_v29  ;;  %v721_v36 = vmul.f32 %v1926_v41, %v693_v33  ;;  %v789_v22 = vld [vmem:[%s2121_s8] sm:$0xff] }
 0x3b5   :  { %v697_v31 = vrot.slane %v1506_v20, %v555_v9  ;;  %v701_v32 = vrot.slane %v1506_v20, %v559_v17  ;;  %v724_v35 = vmul.f32 %v1929_v45, %v705_v3  ;;  %v725_v37 = vmul.f32 %v1932_v46, %v709_v4  ;;  %v793_v9 = vld [vmem:[%s2122_s9] sm:$0xff]  ;;  %v794_v17 = vld [vmem:[%s2122_s9 + $0x8] sm:$0xff] }
 0x3b6   :  { %728 = vperm.xlu0 %1472, %v718_v23   ;;  %v1427_v38 = vpack.c.bf16 %v794_v17, %v793_v9  ;;  %v1430_v26 = vpack.c.bf16 %v796_v21, %v795_v27  ;;  %v790_v23 = vld [vmem:[%s2121_s8 + $0x8] sm:$0xff]  ;;  %v94_v3 = vld [vmem:[#allocation2] sm:$0xff] }
 0x3b7   :  { %v722_v2 = vmul.f32 %v1498_v43, %v697_v31  ;;  %v723_v34 = vmul.f32 %v1500_v44, %v701_v32  ;;  %v792_v31 = vld [vmem:[%s2121_s8 + $0x18] sm:$0xff]  ;;  %v1065_v32 = vld [vmem:[#allocation7] sm:$0xff]  ;;  %v1067_v4 = vld [vmem:[#allocation7 + $0x10] sm:$0xff] }
 0x3b8   :  { %1428 = vmatpush3.bf16.msra.mxu0 %v1427_v38  ;;  %v1278_v21 = vld [vmem:[%s2124_s11] ss:$0 sm:$0xff] }
 0x3b9   :  { %1429 = vmatprep.subr.bf16.mxu0 %v1640_v0 }
 0x3ba   :  { %733 = vperm.xlu0 %1472, %v719_v28  }
 0x3bc   :  { %1431 = vmatpush3.bf16.msra.mxu0 %v1430_v26 }
 0x3bd   :  { %1432 = vmatprep.subr.bf16.mxu0 %v1640_v0 }
 0x3be   :  { %738 = vperm.xlu0 %1472, %v720_v30   ;;  %v1433_v30 = vpack.c.bf16 %v790_v23, %v789_v22 }
 0x3c2   :  { %743 = vperm.xlu0 %1472, %v721_v36   ;;  %v791_v36 = vld [vmem:[%s2121_s8 + $0x10] sm:$0xff] }
 0x3c6   :  { %748 = vperm.xlu0 %1472, %v722_v2   ;;  %v1436_v2 = vpack.c.bf16 %v792_v31, %v791_v36 }
 0x3ca   :  { %753 = vperm.xlu0 %1472, %v723_v34   ;;  %v1066_v34 = vld [vmem:[#allocation7 + $0x8] sm:$0xff] }
 0x3ce   :  { %758 = vperm.xlu0 %1472, %v724_v35   ;;  %v1445_v35 = vpack.c.bf16 %v1066_v34, %v1065_v32 }
 0x3d2   :  { %763 = vperm.xlu0 %1472, %v725_v37   ;;  %v1068_v37 = vld [vmem:[#allocation7 + $0x18] sm:$0xff] }
 0x3d3   :  { %v1448_v9 = vpack.c.bf16 %v1068_v37, %v1067_v4 }
 0x3f1   :  { %v1028_v41 = vpop.f32.mrb[8].mxu1 }
 0x3f2   :  { %v2007_v42 = vadd.f32 %v1279_v39, %v1028_v41  ;;  %v1389_v43 = vpop.f32.mrb[9].mxu1 }
 0x3f4   :  { %1040 = vrot.lane.b32.xlu1 %v2007_v42, %s1645_s20 }
 0x435   :  { %v729_v44 = vpop.permute.xlu0 %728 }
 0x436   :  { %v766_v52 = vmul.f32 %v729_v44, %v96_v25 }
 0x438   :  { %v774_v59 = vsel %vm115_vm1, %v766_v52, 0.0 }
 0x439   :  { %v734_v45 = vpop.permute.xlu0 %733 }
 0x43a   :  { %v767_v50 = vmul.f32 %v734_v45, %v97_v47 }
 0x43c   :  { %v775_v56 = vsel %vm115_vm1, %v767_v50, 0.0 }
 0x43d   :  { %v739_v46 = vpop.permute.xlu0 %738  ;;  %v776_v62 = vadd.f32 %v775_v56, %v774_v59  ;;  %v1064_v56 = vld [vmem:[%s2126_s13 + $0x18] sm:$0xff] }
 0x43e   :  { %v768_v53 = vmul.f32 %v739_v46, %v98_v48 }
 0x440   :  { %v777_v60 = vsel %vm115_vm1, %v768_v53, 0.0  ;;  %v1062_v53 = vld [vmem:[%s2126_s13 + $0x8] sm:$0xff] }
 0x441   :  { %v744_v49 = vpop.permute.xlu0 %743  ;;  %v778_v7 = vadd.f32 %v777_v60, %v776_v62 }
 0x442   :  { %v769_v57 = vmul.f32 %v744_v49, %v99_v51 }
 0x444   :  { %v779_v5 = vsel %vm115_vm1, %v769_v57, 0.0 }
 0x445   :  { %v749_v55 = vpop.permute.xlu0 %748  ;;  %v780_v11 = vadd.f32 %v779_v5, %v778_v7 }
 0x446   :  { %v770_v61 = vmul.f32 %v749_v55, %v100_v54  ;;  %v1063_v54 = vld [vmem:[%s2126_s13 + $0x10] sm:$0xff] }
 0x447   :  { %v1454_v57 = vpack.c.bf16 %v1064_v56, %v1063_v54 }
 0x448   :  { %v781_v10 = vsel %vm115_vm1, %v770_v61, 0.0 }
 0x449   :  { %v754_v63 = vpop.permute.xlu0 %753  ;;  %v782_v40 = vadd.f32 %v781_v10, %v780_v11 }
 0x44a   :  { %v771_v6 = vmul.f32 %v754_v63, %v101_v58 }
 0x44c   :  { %v783_v13 = vsel %vm115_vm1, %v771_v6, 0.0 }
 0x44d   :  { %v759_v12 = vpop.permute.xlu0 %758  ;;  %v784_v19 = vadd.f32 %v783_v13, %v782_v40 }
 0x44e   :  { %v772_v14 = vmul.f32 %v759_v12, %v102_v8 }
 0x450   :  { %v785_v18 = vsel %vm115_vm1, %v772_v14, 0.0 }
 0x451   :  { %v764_v20 = vpop.permute.xlu0 %763  ;;  %v786_v28 = vadd.f32 %v785_v18, %v784_v19 }
 0x452   :  { %v773_v24 = vmul.f32 %v764_v20, %v103_v16 }
 0x454   :  { %v787_v29 = vsel %vm115_vm1, %v773_v24, 0.0 }
 0x455   :  { %v788_v33 = vadd.f32 %v787_v29, %v786_v28 }
 0x457   :  { %1366 = vmatmul.mubr.msk.f32.vlgmr.msra.gmra.mrb[2].mxu0 %vm115_vm1, %v788_v33 }
 0x458   :  { %1434 = vmatpush3.bf16.msra.mxu0 %v1433_v30  ;;  %1376 = vmatprep.mubr.msk.f32.mxu0 %vm1641_vm0, %v1642_v1 }
 0x459   :  { %1435 = vmatprep.subr.bf16.mxu0 %v1640_v0 }
 0x45c   :  { %1437 = vmatpush3.bf16.msra.mxu0 %v1436_v2 }
 0x45d   :  { %1444 = vmatprep.subr.bf16.mxu0 %v1640_v0 }
 0x45f   :  { %1377 = vmatmul.mubr.msk.f32.vlgmr.msra.gmra.mrb[4].mxu0 %vm115_vm1, %v94_v3 }
 0x460   :  { %1446 = vmatpush3.bf16.msra.mxu0 %v1445_v35  ;;  %1398 = vmatprep.mubr.msk.f32.mxu0 %vm1641_vm0, %v1642_v1 }
 0x461   :  { %1447 = vmatprep.subr.bf16.mxu0 %v1640_v0 }
 0x464   :  { %1449 = vmatpush3.bf16.msra.mxu0 %v1448_v9 }
 0x466   :  { %v1041_v48 = vpop.permute.xlu1 %1040 }
 0x467   :  { %1399 = vmatmul.mubr.msk.f32.vlgmr.msra.gmra.mrb[6].mxu0 %vm115_vm1, %v788_v33 }
 0x52a   :  { %v866_v17 = vpop.f32.mrb[2].mxu0 }
 0x52b   :  { %v1367_v38 = vpop.f32.mrb[3].mxu0 }
 0x532   :  { %v939_v27 = vpop.f32.mrb[4].mxu0 }
 0x533   :  { %v940_v26 = vadd.f32 %v939_v27, %v866_v17  ;;  %v1378_v39 = vpop.f32.mrb[5].mxu0 }
 0x535   :  { %v950_v41 = vadd.f32 %v1278_v21, %v940_v26 }
 0x537   :  { %v1032_v43 = vadd.f32 %v2007_v42, %v950_v41  ;;  %v1061_v42 = vld [vmem:[%s2126_s13] sm:$0xff] }
 0x538   :  { %v1451_v55 = vpack.c.bf16 %v1062_v53, %v1061_v42 }
 0x539   :  { %v1033_v44 = vsub.f32 0.0, %v1032_v43 }
 0x53a   :  { %v1135_v45 = vpop.f32.mrb[6].mxu0  ;;  %1452 = vmatpush3.bf16.msra.mxu1 %v1451_v55 }
 0x53b   :  { %v1034_v1 = vmul.f32 1.442695, %v1033_v44  ;;  %v1400_v46 = vpop.f32.mrb[7].mxu0  ;;  %1453 = vmatprep.subr.bf16.mxu1 %v1640_v0  ;;  %v1283_v0 = vld [vmem:[%s2128_s15] ss:$0 sm:$0xff] }
 0x53d   :  { %1507 = vpow2.f32 %v1034_v1 }
 0x53e   :  { %1455 = vmatpush3.bf16.msra.mxu1 %v1454_v57 }
 0x547   :  { %v1508_v47 = vpop.eup %1507 }
 0x548   :  { %v1036_v25 = vadd.f32 1.0, %v1508_v47 }
 0x54a   :  { %1509 = vrcp.f32 %v1036_v25 }
 0x554   :  { %v1510_v49 = vpop.eup %1509 }
 0x555   :  { %v1043_v50 = vmul.f32 %v1510_v49, %v1041_v48  ;;  %v1050_v60 = vsub.f32 1.0, %v1510_v49 }
 0x557   :  { %1045 = vrot.lane.b32.xlu0 %v1043_v50, %s1645_s20  ;;  %s1646_s20 = smov 96  }
 0x5c9   :  { %v1046_v51 = vpop.permute.xlu0 %1045 }
 0x5ca   :  { %v1048_v52 = vadd.f32 %v1046_v51, %v950_v41 }
 0x5cc   :  { %1511 = vtanh.f32 %v1048_v52 }
 0x5d6   :  { %v1512_v58 = vpop.eup %1511 }
 0x5d7   :  { %1052 = vrot.lane.b32.xlu0 %v1512_v58, %s1646_s20 }
 0x5db   :  { %1056 = vrot.lane.b32.xlu0 %v1808_v15, %s1647_s4 }
 0x649   :  { %v1053_v59 = vpop.permute.xlu0 %1052 }
 0x64a   :  { %v1055_v62 = vmul.f32 %v1053_v59, %v1050_v60 }
 0x64d   :  { %v1057_v61 = vpop.permute.xlu0 %1056 }
 0x64e   :  { %v1059_v63 = vmul.f32 %v1510_v49, %v1057_v61 }
 0x650   :  { %v1060_v5 = vadd.f32 %v1059_v63, %v1055_v62 }
 0x652   :  { %1140 = vrot.lane.b32.xlu0 %v1060_v5, %s1646_s20 }
 0x6c4   :  { %v1141_v6 = vpop.permute.xlu0 %1140 }
 0x6c5   :  { %1234 = vst.msk [vmem:[#allocation9] sm:$0xff] %vm115_vm1, %v1141_v6  ;;  %1410 = vmatmul.mubr.msk.f32.vlgmr.msra.gmra.mrb[10].mxu1 %vm115_vm1, %v1141_v6 }
 0x798   :  { %v1210_v7 = vpop.f32.mrb[10].mxu1 }
 0x799   :  { %v1211_v8 = vadd.f32 %v1210_v7, %v1135_v45  ;;  %v1411_v10 = vpop.f32.mrb[11].mxu1 }
 0x79b   :  { %v1221_v15 = vadd.f32 %v1283_v0, %v1211_v8 }
 0x79d   :  { %1222 = vmax.xlane.f32.xlu1 %v1221_v15 }
 0x82a   :  { %v1223_v11 = vpop.xlane.xlu1 %1222 }
 0x82b   :  { %v1224_v12 = vsub.f32 %v1221_v15, %v1223_v11 }
 0x82d   :  { %v1225_v13 = vmul.f32 1.442695, %v1224_v12 }
 0x82f   :  { %1513 = vpow2.f32 %v1225_v13 }
 0x839   :  { %v1514_v14 = vpop.eup %1513 }
 0x83a   :  { %1227 = vadd.xlane.f32.xlu0 %v1514_v14 }
 0x83b   :  { %1594 = shalt.err (!%p1591_p0)
}
 0x83c   :  { %s1595_s22 = scalar_lea.hbm %s2130_s17, 128 }
 0x83d   :  { %p1596_p1 = scmp.ne.s32.totalorder %s2130_s17, %s1595_s22  ;;  %p1599_p2 = scmp.lt.u32.totalorder %s1595_s22, %s2130_s17 }
 0x83f   :  { %p1601_p3 = pnand %p1599_p2, %p1596_p1 }
 0x841   :  { %1604 = shalt.err (!%p1601_p3)
}
 0x842   :  { %1254 = dma.vmem_to_hbm [thread:$0]  %s1252_s24, 128, %s2130_s17, [#allocation10]  }
 0x843   :  { %s1649_s3 = smov [#allocation8]  }
 0x844   :  { %s1241_s27 = sshll.u32 %s1649_s3, 4  ;;  %s1242_s27 = int_to_ptr.vmem [resolvable:$true] %s1241_s27 }
 0x845   :  { %s1605_s28 = scalar_lea.vmem %s1242_s27, 128  ;;  %p1610_p5 = scmp.lt.s32.totalorder %s1242_s27, %s1242_s27 }
 0x846   :  { %p1606_p4 = scmp.ne.s32.totalorder %s1242_s27, %s1605_s28  ;;  %p1611_p6 = scmp.lt.s32.totalorder %s1605_s28, %s1605_s28 }
 0x848   :  { %p1612_p7 = por %p1611_p6, %p1610_p5 }
 0x84a   :  { %p1613_p8 = pnand %p1612_p7, %p1606_p4 }
 0x8c7   :  { %v1228_v40 = vpop.xlane.xlu0 %1227 }
 0x8c8   :  { %1515 = vlog2.f32 %v1228_v40 }
 0x8d2   :  { %v1516_v16 = vpop.eup %1515 }
 0x8d3   :  { %v1230_v18 = vmul.f32 0.6931472, %v1516_v16 }
 0x8d5   :  { %v1231_v19 = vsub.f32 %v1224_v12, %v1230_v18 }
 0x8d7   :  { %1232 = vst [vmem:[#allocation8] sm:$0xff] %v1231_v19 }
 0x8d8   :  { %1616 = shalt.err (!%p1613_p8)
}
 0x8d9   :  { %s1617_s17 = scalar_lea.hbm %s2129_s16, 128 }
 0x8da   :  { %p1618_p9 = scmp.ne.s32.totalorder %s2129_s16, %s1617_s17  ;;  %p1621_p10 = scmp.lt.u32.totalorder %s1617_s17, %s2129_s16 }
 0x8dc   :  { %p1623_p11 = pnand %p1621_p10, %p1618_p9 }
 0x8de   :  { %1626 = shalt.err (!%p1623_p11)
}
 0x8df   :  { %1244 = dma.vmem_to_hbm [thread:$0]  %s1242_s27, 128, %s2129_s16, [#allocation4]  }
 0x8e0   :  { %1631 = dma.done.wait [#allocation4], 128  }
 0x8e1   :  { %1632 = vsyncadd [#allocation4], 4294967168 }
 0x8e2   :  { %1633 = dma.done.wait [#allocation10], 128  }
 0x8e3   :  { %1634 = vsyncadd [#allocation10], 4294967168 }
 0x8e4   :  { %1261 = vsyncpa [#allocation3], 1 }
 0x8e5   :  { %1262 = vsyncpa [#allocation6], 1 }
 0x8e6   :  { %1263 = vsyncpa [#allocation4], 1 }
 0x8e7   :  { %1264 = vsyncpa [#allocation10], 1 }

</bundles_post_ra>
